<compile_context>
chip_gen: v6e
topology: v6e:2x2x1
jax: 0.10.0
libtpu: 0.0.40
codegen_flags: <defaults>
</compile_context>

<pallas_src>
import functools

import jax
import jax.numpy as jnp
from jax import lax
from jax.experimental import pallas as pl
from jax.experimental.pallas import tpu as pltpu

_LANES = 128
_SUBLANES = 8
_BM_THRESHOLD = 1e-8


def _rsum(x):
    # Sublane-direction partial sums first (VPU adds across vregs), then one
    # lane reduce per scalar quantity.
    part = jnp.sum(x, axis=1, keepdims=True)      # (bt, 1, 128)
    return jnp.sum(part, axis=2, keepdims=True)   # (bt, 1, 1)


def _row_validity(shape, row_tile, rows_valid):
    r = lax.broadcasted_iota(jnp.int32, shape, 1)
    return (pl.program_id(1) * row_tile + r) < rows_valid


# ---------------------------------------------------------------------------
# Fast path: whole image slab resident in VMEM, single pass over HBM.
# ---------------------------------------------------------------------------
def _fused_kernel(abs_ref, sparse_ref, wmask_ref, scaled_ref, stats_ref, *, eps):
    a = abs_ref[...].astype(jnp.float32)
    d = sparse_ref[...].astype(jnp.float32)
    w = wmask_ref[...].astype(jnp.float32)
    one = jnp.float32(1.0)
    zero = jnp.float32(0.0)

    # Zero padding (if any) gives w == 0 and d == 0 -> bm == am == 0 there,
    # so no explicit tail mask is needed.
    bm = jnp.where(w > jnp.float32(_BM_THRESHOLD), one, zero)
    mean_sparse = _rsum(d * bm) / _rsum(bm)                  # (bt, 1, 1)

    am = jnp.where(d > jnp.float32(0.5) * mean_sparse, one, zero)
    # approx=True would push this onto the EUP (perf knob); approx=False keeps
    # full precision vs. the torch reference.
    inv = pl.reciprocal(jnp.float32(eps) + a, approx=False)
    ssm = d * am * inv

    sum_am = _rsum(am)
    sum_ssm = _rsum(ssm)
    mean_scale = sum_ssm / sum_am                            # (bt, 1, 1)

    # Centered (numerically stable) variance; data is VMEM resident so this
    # second elementwise traversal hides under DMA.
    centered = ssm - am * mean_scale
    scale_std = jnp.sqrt(_rsum(centered * centered) / sum_am)

    scaled_ref[...] = (mean_scale * a).astype(scaled_ref.dtype)

    # Per-batch scalars packed lane-dense: row 0 = scale_std, row 1 = mean_scale.
    row_id = lax.broadcasted_iota(jnp.int32, stats_ref.shape, 1)
    stats_ref[...] = jnp.where(row_id == 0, scale_std, mean_scale)


# ---------------------------------------------------------------------------
# Row-split path kernels (rows in the grid, VMEM accumulators, 3 phases).
# ---------------------------------------------------------------------------
def _sparse_mean_kernel(sparse_ref, wmask_ref, sums_ref, acc_dw, acc_bm, *,
                        row_tile, rows_valid, mask_tail):
    @pl.when(pl.program_id(1) == 0)
    def _():
        acc_dw[...] = jnp.zeros_like(acc_dw)
        acc_bm[...] = jnp.zeros_like(acc_bm)

    d = sparse_ref[...].astype(jnp.float32)
    w = wmask_ref[...].astype(jnp.float32)
    if mask_tail:
        valid = _row_validity(d.shape, row_tile, rows_valid)
        d = jnp.where(valid, d, 0.0)
        w = jnp.where(valid, w, 0.0)
    bm = jnp.where(w > jnp.float32(_BM_THRESHOLD), 1.0, 0.0)
    acc_dw[...] += _rsum(d * bm)
    acc_bm[...] += _rsum(bm)

    @pl.when(pl.program_id(1) == pl.num_programs(1) - 1)
    def _():
        row_id = lax.broadcasted_iota(jnp.int32, sums_ref.shape, 1)
        sums_ref[...] = jnp.where(row_id == 0, acc_dw[...], acc_bm[...])


def _scale_sum_kernel(mean_sparse_ref, abs_ref, sparse_ref, sums_ref,
                      acc_am, acc_ssm, *, eps, row_tile, rows_valid, mask_tail):
    @pl.when(pl.program_id(1) == 0)
    def _():
        acc_am[...] = jnp.zeros_like(acc_am)
        acc_ssm[...] = jnp.zeros_like(acc_ssm)

    a = abs_ref[...].astype(jnp.float32)
    d = sparse_ref[...].astype(jnp.float32)
    if mask_tail:
        valid = _row_validity(d.shape, row_tile, rows_valid)
        d = jnp.where(valid, d, 0.0)
        a = jnp.where(valid, a, 1.0)
    mean_sparse = mean_sparse_ref[...].astype(jnp.float32)   # (bt, 1, 1)
    am = jnp.where(d > jnp.float32(0.5) * mean_sparse, 1.0, 0.0)
    inv = pl.reciprocal(jnp.float32(eps) + a, approx=False)
    ssm = d * am * inv
    acc_am[...] += _rsum(am)
    acc_ssm[...] += _rsum(ssm)

    @pl.when(pl.program_id(1) == pl.num_programs(1) - 1)
    def _():
        row_id = lax.broadcasted_iota(jnp.int32, sums_ref.shape, 1)
        sums_ref[...] = jnp.where(row_id == 0, acc_am[...], acc_ssm[...])


def _scale_apply_kernel(mean_sparse_ref, mean_scale_ref, abs_ref, sparse_ref,
                        scaled_ref, c2_ref, acc_c2, *, eps, row_tile,
                        rows_valid, mask_tail):
    @pl.when(pl.program_id(1) == 0)
    def _():
        acc_c2[...] = jnp.zeros_like(acc_c2)

    a = abs_ref[...].astype(jnp.float32)
    d = sparse_ref[...].astype(jnp.float32)
    if mask_tail:
        valid = _row_validity(d.shape, row_tile, rows_valid)
        d = jnp.where(valid, d, 0.0)
        a = jnp.where(valid, a, 1.0)
    mean_sparse = mean_sparse_ref[...].astype(jnp.float32)
    mean_scale = mean_scale_ref[...].astype(jnp.float32)
    am = jnp.where(d > jnp.float32(0.5) * mean_sparse, 1.0, 0.0)
    inv = pl.reciprocal(jnp.float32(eps) + a, approx=False)
    ssm = d * am * inv
    centered = ssm - am * mean_scale
    acc_c2[...] += _rsum(centered * centered)

    scaled_ref[...] = (mean_scale * a).astype(scaled_ref.dtype)

    @pl.when(pl.program_id(1) == pl.num_programs(1) - 1)
    def _():
        c2_ref[...] = jnp.broadcast_to(acc_c2[...], c2_ref.shape)


# ---------------------------------------------------------------------------
# Wrapper
# ---------------------------------------------------------------------------
def depth_scaling_layer(absolute_depth, sparse_depth, weighted_sparse_mask,
                        epsilon=1e-8, force_row_split=False, row_tile=None):
    """Pallas implementation of DepthScalingLayer.forward.

    Returns (scaled_depth [B,C,H,W], mean(scale_stds / mean_scales) scalar),
    reproducing the torch broadcasting semantics exactly.
    """
    B, C, H, W = absolute_depth.shape
    n = C * H * W
    out_dtype = absolute_depth.dtype
    in_bytes = jnp.dtype(absolute_depth.dtype).itemsize
    out_bytes = jnp.dtype(out_dtype).itemsize

    # Lane-dense slab layout (B, rows, 128). Free reshape when n % 128 == 0.
    if n % _LANES == 0:
        n_pad = n
    else:
        # TODO(synk): handle the sub-128 tail in-kernel (masked last lane row)
        # so resolutions with C*H*W % 128 != 0 avoid this pad copy entirely.
        n_pad = ((n + _LANES - 1) // _LANES) * _LANES
    rows = n_pad // _LANES

    def to_slab(x):
        flat = x.reshape(B, n)
        if n_pad != n:
            flat = jnp.pad(flat, ((0, 0), (0, n_pad - n)))
        return flat.reshape(B, rows, _LANES)

    a_slab = to_slab(absolute_depth)
    d_slab = to_slab(sparse_depth)
    w_slab = to_slab(weighted_sparse_mask)

    # Generation-aware VMEM budget (v5e/v6e: 128 MiB, v7x: 64 MiB).
    try:
        vmem_capacity = int(getattr(pltpu.get_tpu_info(), "vmem_capacity_bytes",
                                    64 << 20))
    except Exception:
        vmem_capacity = 64 << 20
    budget = max(32 << 20, int(0.85 * vmem_capacity))
    vmem_limit = min(budget, vmem_capacity)

    def fused_footprint(bt):
        elems = bt * rows * _LANES
        # 3 double-buffered inputs + double-buffered image output + ~5 f32 temps.
        return elems * (2 * 3 * in_bytes + 2 * out_bytes + 5 * 4)

    # batch_tile: largest divisor of B that fits the budget, capped at B // 2
    # so the parallel grid axis keeps >= 2 steps (both v7x TensorCores busy).
    bt_cap = max(1, B // 2)
    divisors = [d for d in range(1, B + 1) if B % d == 0 and d <= bt_cap] or [1]
    batch_tile = None
    for d in sorted(divisors, reverse=True):
        if fused_footprint(d) <= budget:
            batch_tile = d
            break
    use_row_split = force_row_split or batch_tile is None
    if batch_tile is None:
        batch_tile = max(divisors)
    bgrid = B // batch_tile

    params1 = pltpu.CompilerParams(dimension_semantics=("parallel",),
                                   vmem_limit_bytes=vmem_limit)
    params2 = pltpu.CompilerParams(dimension_semantics=("parallel", "arbitrary"),
                                   vmem_limit_bytes=vmem_limit)

    if not use_row_split:
        # ---- Fast path: whole image slab per grid step, single HBM pass. ----
        img_spec = pl.BlockSpec((batch_tile, rows, _LANES), lambda i: (i, 0, 0))
        scaled_slab, stats = pl.pallas_call(
            functools.partial(_fused_kernel, eps=float(epsilon)),
            out_shape=(jax.ShapeDtypeStruct((B, rows, _LANES), out_dtype),
                       jax.ShapeDtypeStruct((B, 2, _LANES), jnp.float32)),
            grid=(bgrid,),
            in_specs=[img_spec, img_spec, img_spec],
            out_specs=(img_spec,
                       pl.BlockSpec((batch_tile, 2, _LANES), lambda i: (i, 0, 0))),
            compiler_params=params1,
        )(a_slab, d_slab, w_slab)
        scale_stds = stats[:, 0, 0]
        mean_scales = stats[:, 1, 0]
    else:
        # ---- Row-split path: rows in the grid, VMEM accumulators, 3 phases. ----
        if row_tile is not None:
            rt = int(row_tile)
        elif rows <= _SUBLANES:
            rt = rows
        else:
            rt_target = max(1, (2 << 20) // (batch_tile * _LANES * in_bytes))
            rt = max(_SUBLANES, (min(rt_target, rows) // _SUBLANES) * _SUBLANES)
        rgrid = pl.cdiv(rows, rt)
        mask_tail = (rows % rt) != 0
        static = dict(row_tile=rt, rows_valid=rows, mask_tail=mask_tail)

        blk = lambda b, r: (b, r, 0)
        fixed = lambda b, r: (b, 0, 0)
        # TODO(synk): sweep pipeline_mode=pl.Buffered(3) on the row input specs.
        row_spec = pl.BlockSpec((batch_tile, rt, _LANES), blk)
        scalar_spec = pl.BlockSpec((batch_tile, 1, 1), fixed)
        sums_spec = pl.BlockSpec((batch_tile, 2, _LANES), fixed)

        # Phase 1: per-batch sum(d * bm) and sum(bm) -> mean sparse depth.
        sums1 = pl.pallas_call(
            functools.partial(_sparse_mean_kernel, **static),
            out_shape=jax.ShapeDtypeStruct((B, 2, _LANES), jnp.float32),
            grid=(bgrid, rgrid),
            in_specs=[row_spec, row_spec],
            out_specs=sums_spec,
            scratch_shapes=[pltpu.VMEM((batch_tile, 1, 1), jnp.float32),
                            pltpu.VMEM((batch_tile, 1, 1), jnp.float32)],
            compiler_params=params2,
        )(d_slab, w_slab)
        mean_sparse = (sums1[:, 0, 0] / sums1[:, 1, 0]).reshape(B, 1, 1)
        mean_sparse = mean_sparse.astype(jnp.float32)

        # Phase 2: per-batch sum(above_mean_mask) and sum(sparse_scale_map).
        sums2 = pl.pallas_call(
            functools.partial(_scale_sum_kernel, eps=float(epsilon), **static),
            out_shape=jax.ShapeDtypeStruct((B, 2, _LANES), jnp.float32),
            grid=(bgrid, rgrid),
            in_specs=[scalar_spec, row_spec, row_spec],
            out_specs=sums_spec,
            scratch_shapes=[pltpu.VMEM((batch_tile, 1, 1), jnp.float32),
                            pltpu.VMEM((batch_tile, 1, 1), jnp.float32)],
            compiler_params=params2,
        )(mean_sparse, a_slab, d_slab)
        sum_am = sums2[:, 0, 0]
        sum_ssm = sums2[:, 1, 0]
        mean_scales = sum_ssm / sum_am
        mean_scale_arr = mean_scales.reshape(B, 1, 1).astype(jnp.float32)

        # Phase 3: centered variance sum + scaled-depth write.
        scaled_slab, c2 = pl.pallas_call(
            functools.partial(_scale_apply_kernel, eps=float(epsilon), **static),
            out_shape=(jax.ShapeDtypeStruct((B, rows, _LANES), out_dtype),
                       jax.ShapeDtypeStruct((B, 1, _LANES), jnp.float32)),
            grid=(bgrid, rgrid),
            in_specs=[scalar_spec, scalar_spec, row_spec, row_spec],
            out_specs=(row_spec,
                       pl.BlockSpec((batch_tile, 1, _LANES), fixed)),
            scratch_shapes=[pltpu.VMEM((batch_tile, 1, 1), jnp.float32)],
            compiler_params=params2,
        )(mean_sparse, mean_scale_arr, a_slab, d_slab)
        scale_stds = jnp.sqrt(c2[:, 0, 0] / sum_am)

    if n_pad != n:
        scaled = scaled_slab.reshape(B, n_pad)[:, :n].reshape(B, C, H, W)
    else:
        scaled = scaled_slab.reshape(B, C, H, W)

    # Reproduce the torch broadcasting quirk exactly:
    #   scale_stds (B,) / mean_scales (B,1,1,1) -> (B,1,1,B), then mean over all.
    ratio = scale_stds[None, None, None, :] / mean_scales.reshape(B, 1, 1, 1)
    return scaled, jnp.mean(ratio)


# ---------------------------------------------------------------------------
# Pure-JAX reference (port of the torch forward) and self-test.
# ---------------------------------------------------------------------------
def _reference(absolute_depth, sparse_depth, weighted_sparse_mask, epsilon=1e-8):
    bm = jnp.where(weighted_sparse_mask > 1e-8, 1.0, 0.0)
    mean_sd = (jnp.sum(sparse_depth * bm, axis=(1, 2, 3), keepdims=True)
               / jnp.sum(bm, axis=(1, 2, 3), keepdims=True))
    am = jnp.where(sparse_depth > 0.5 * mean_sd, 1.0, 0.0)
    ssm = sparse_depth * am / (epsilon + absolute_depth)
    mean_scales = (jnp.sum(ssm, axis=(1, 2, 3), keepdims=True)
                   / jnp.sum(am, axis=(1, 2, 3), keepdims=True))
    centered = ssm - am * mean_scales
    stds = jnp.sqrt(jnp.sum(centered * centered, axis=(1, 2, 3))
                    / jnp.sum(am, axis=(1, 2, 3)))
    scales = jnp.sum(ssm, axis=(1, 2, 3)) / jnp.sum(am, axis=(1, 2, 3))
    out1 = scales.reshape(-1, 1, 1, 1) * absolute_depth
    out2 = jnp.mean(stds[None, None, None, :] / mean_scales)
    return out1, out2


def _make_inputs(key, shape):
    k1, k2, k3 = jax.random.split(key, 3)
    absolute_depth = jax.random.uniform(k1, shape, jnp.float32,
                                        minval=0.5, maxval=5.0)
    raw_w = jax.random.uniform(k2, shape, jnp.float32)
    weighted_sparse_mask = jnp.where(raw_w > 0.7, raw_w, 0.0)
    raw_d = jax.random.uniform(k3, shape, jnp.float32, minval=1.0, maxval=6.0)
    sparse_depth = jnp.where(weighted_sparse_mask > 0.0, raw_d, 0.0)
    return absolute_depth, sparse_depth, weighted_sparse_mask


def _check(name, shape, key, **kwargs):
    a, d, w = _make_inputs(key, shape)
    scaled, ratio = depth_scaling_layer(a, d, w, **kwargs)
    jax.block_until_ready(scaled)
    jax.block_until_ready(ratio)
    ref_scaled, ref_ratio = _reference(a, d, w)
    assert jnp.allclose(scaled, ref_scaled, rtol=1e-5, atol=1e-5), \
        f"{name}: scaled depth mismatch"
    assert jnp.allclose(ratio, ref_ratio, rtol=1e-5, atol=1e-5), \
        f"{name}: ratio mismatch"


if __name__ == "__main__":
    key = jax.random.PRNGKey(0)
    k1, k2, k3 = jax.random.split(key, 3)

    # Fast path: lane-dense slab, no padding (C*H*W % 128 == 0).
    _check("fused", (2, 4, 16, 16), k1)
    # Fast path with a sub-128 tail (wrapper pads to the next multiple of 128;
    # zero padding is excluded in-kernel with no explicit mask).
    _check("fused_tail", (2, 1, 5, 30), k2)
    # Row-split path (forced; exercises the large-image / v7x-VMEM structure,
    # including a masked partial last row block).
    _check("row_split", (2, 3, 20, 32), k3, force_row_split=True)

    print("KERNEL_OK")
</pallas_src>

<mosaic_0001>
module attributes {stable_mosaic.version = 11 : i64} {
  func.func @_fused_kernel(%arg0: i32, %arg1: memref<1x8x128xf32, #tpu.memory_space<vmem>>, %arg2: memref<1x8x128xf32, #tpu.memory_space<vmem>>, %arg3: memref<1x8x128xf32, #tpu.memory_space<vmem>>, %arg4: memref<1x8x128xf32, #tpu.memory_space<vmem>>, %arg5: memref<1x2x128xf32, #tpu.memory_space<vmem>>) attributes {dimension_semantics = [#tpu.dimension_semantics<parallel>], iteration_bounds = array<i64: 2>, scalar_prefetch = 0 : i64, scratch_operands = 0 : i64, tpu.core_type = #tpu.core_type<tc>, window_params = [{transform_indices = @transform_0, window_bounds = array<i64: 1, 8, 128>}, {transform_indices = @transform_1, window_bounds = array<i64: 1, 8, 128>}, {transform_indices = @transform_2, window_bounds = array<i64: 1, 8, 128>}, {transform_indices = @transform_3, window_bounds = array<i64: 1, 8, 128>}, {transform_indices = @transform_4, window_bounds = array<i64: 1, 2, 128>}]} {
    %c0 = arith.constant 0 : index
    %c0_0 = arith.constant 0 : index
    %c0_1 = arith.constant 0 : index
    %0 = vector.load %arg1[%c0, %c0_0, %c0_1] : memref<1x8x128xf32, #tpu.memory_space<vmem>>, vector<1x8x128xf32>
    %c0_2 = arith.constant 0 : index
    %c0_3 = arith.constant 0 : index
    %c0_4 = arith.constant 0 : index
    %1 = vector.load %arg2[%c0_2, %c0_3, %c0_4] : memref<1x8x128xf32, #tpu.memory_space<vmem>>, vector<1x8x128xf32>
    %c0_5 = arith.constant 0 : index
    %c0_6 = arith.constant 0 : index
    %c0_7 = arith.constant 0 : index
    %2 = vector.load %arg3[%c0_5, %c0_6, %c0_7] : memref<1x8x128xf32, #tpu.memory_space<vmem>>, vector<1x8x128xf32>
    %cst = arith.constant 9.99999993E-9 : f32
    %3 = vector.broadcast %cst : f32 to vector<1x8x128xf32>
    %4 = arith.cmpf ogt, %2, %3 : vector<1x8x128xf32>
    %cst_8 = arith.constant 1.000000e+00 : f32
    %cst_9 = arith.constant 0.000000e+00 : f32
    %5 = vector.broadcast %cst_8 : f32 to vector<1x8x128xf32>
    %6 = vector.broadcast %cst_9 : f32 to vector<1x8x128xf32>
    %7 = arith.select %4, %5, %6 : vector<1x8x128xi1>, vector<1x8x128xf32>
    %8 = arith.mulf %1, %7 : vector<1x8x128xf32>
    %cst_10 = arith.constant dense<0.000000e+00> : vector<1x128xf32>
    %9 = vector.multi_reduction <add>, %8, %cst_10 [1] : vector<1x8x128xf32> to vector<1x128xf32>
    %10 = vector.shape_cast %9 : vector<1x128xf32> to vector<1x1x128xf32>
    %cst_11 = arith.constant dense<0.000000e+00> : vector<1x1xf32>
    %11 = vector.multi_reduction <add>, %10, %cst_11 [2] : vector<1x1x128xf32> to vector<1x1xf32>
    %12 = vector.shape_cast %11 : vector<1x1xf32> to vector<1x1x1xf32>
    %cst_12 = arith.constant dense<0.000000e+00> : vector<1x128xf32>
    %13 = vector.multi_reduction <add>, %7, %cst_12 [1] : vector<1x8x128xf32> to vector<1x128xf32>
    %14 = vector.shape_cast %13 : vector<1x128xf32> to vector<1x1x128xf32>
    %cst_13 = arith.constant dense<0.000000e+00> : vector<1x1xf32>
    %15 = vector.multi_reduction <add>, %14, %cst_13 [2] : vector<1x1x128xf32> to vector<1x1xf32>
    %16 = vector.shape_cast %15 : vector<1x1xf32> to vector<1x1x1xf32>
    %17 = arith.divf %12, %16 : vector<1x1x1xf32>
    %cst_14 = arith.constant 5.000000e-01 : f32
    %18 = vector.broadcast %cst_14 : f32 to vector<1x1x1xf32>
    %19 = arith.mulf %18, %17 : vector<1x1x1xf32>
    %20 = vector.broadcast %19 : vector<1x1x1xf32> to vector<1x8x128xf32>
    %21 = arith.cmpf ogt, %1, %20 : vector<1x8x128xf32>
    %cst_15 = arith.constant 1.000000e+00 : f32
    %cst_16 = arith.constant 0.000000e+00 : f32
    %22 = vector.broadcast %cst_15 : f32 to vector<1x8x128xf32>
    %23 = vector.broadcast %cst_16 : f32 to vector<1x8x128xf32>
    %24 = arith.select %21, %22, %23 : vector<1x8x128xi1>, vector<1x8x128xf32>
    %cst_17 = arith.constant 9.99999993E-9 : f32
    %25 = vector.broadcast %cst_17 : f32 to vector<1x8x128xf32>
    %26 = arith.addf %25, %0 : vector<1x8x128xf32>
    %27 = tpu.reciprocal %26 : vector<1x8x128xf32> -> vector<1x8x128xf32>
    %28 = arith.mulf %1, %24 : vector<1x8x128xf32>
    %29 = arith.mulf %28, %27 : vector<1x8x128xf32>
    %cst_18 = arith.constant dense<0.000000e+00> : vector<1x128xf32>
    %30 = vector.multi_reduction <add>, %24, %cst_18 [1] : vector<1x8x128xf32> to vector<1x128xf32>
    %31 = vector.shape_cast %30 : vector<1x128xf32> to vector<1x1x128xf32>
    %cst_19 = arith.constant dense<0.000000e+00> : vector<1x1xf32>
    %32 = vector.multi_reduction <add>, %31, %cst_19 [2] : vector<1x1x128xf32> to vector<1x1xf32>
    %33 = vector.shape_cast %32 : vector<1x1xf32> to vector<1x1x1xf32>
    %cst_20 = arith.constant dense<0.000000e+00> : vector<1x128xf32>
    %34 = vector.multi_reduction <add>, %29, %cst_20 [1] : vector<1x8x128xf32> to vector<1x128xf32>
    %35 = vector.shape_cast %34 : vector<1x128xf32> to vector<1x1x128xf32>
    %cst_21 = arith.constant dense<0.000000e+00> : vector<1x1xf32>
    %36 = vector.multi_reduction <add>, %35, %cst_21 [2] : vector<1x1x128xf32> to vector<1x1xf32>
    %37 = vector.shape_cast %36 : vector<1x1xf32> to vector<1x1x1xf32>
    %38 = arith.divf %37, %33 : vector<1x1x1xf32>
    %39 = vector.broadcast %38 : vector<1x1x1xf32> to vector<1x8x128xf32>
    %40 = arith.mulf %24, %39 : vector<1x8x128xf32>
    %41 = arith.subf %29, %40 : vector<1x8x128xf32>
    %42 = arith.mulf %41, %41 : vector<1x8x128xf32>
    %cst_22 = arith.constant dense<0.000000e+00> : vector<1x128xf32>
    %43 = vector.multi_reduction <add>, %42, %cst_22 [1] : vector<1x8x128xf32> to vector<1x128xf32>
    %44 = vector.shape_cast %43 : vector<1x128xf32> to vector<1x1x128xf32>
    %cst_23 = arith.constant dense<0.000000e+00> : vector<1x1xf32>
    %45 = vector.multi_reduction <add>, %44, %cst_23 [2] : vector<1x1x128xf32> to vector<1x1xf32>
    %46 = vector.shape_cast %45 : vector<1x1xf32> to vector<1x1x1xf32>
    %47 = arith.divf %46, %33 : vector<1x1x1xf32>
    %48 = math.sqrt %47 : vector<1x1x1xf32>
    %49 = vector.broadcast %38 : vector<1x1x1xf32> to vector<1x8x128xf32>
    %50 = arith.mulf %49, %0 : vector<1x8x128xf32>
    %c0_24 = arith.constant 0 : index
    %c0_25 = arith.constant 0 : index
    %c0_26 = arith.constant 0 : index
    %51 = vector.load %arg4[%c0_24, %c0_25, %c0_26] : memref<1x8x128xf32, #tpu.memory_space<vmem>>, vector<1x8x128xf32>
    tpu.vector_store %arg4[%c0_24, %c0_25, %c0_26], %50 {strides = array<i32>} : memref<1x8x128xf32, #tpu.memory_space<vmem>>, vector<1x8x128xf32>,
    %52 = tpu.iota {dimensions = array<i32: 1>} : vector<1x2x128xi32>
    %c0_i32 = arith.constant 0 : i32
    %53 = vector.broadcast %c0_i32 : i32 to vector<1x2x128xi32>
    %54 = arith.cmpi eq, %52, %53 : vector<1x2x128xi32>
    %55 = vector.shape_cast %48 : vector<1x1x1xf32> to vector<1x1x1xf32>
    %56 = vector.broadcast %55 : vector<1x1x1xf32> to vector<1x2x128xf32>
    %57 = vector.shape_cast %38 : vector<1x1x1xf32> to vector<1x1x1xf32>
    %58 = vector.broadcast %57 : vector<1x1x1xf32> to vector<1x2x128xf32>
    %59 = arith.select %54, %56, %58 : vector<1x2x128xi1>, vector<1x2x128xf32>
    %c0_27 = arith.constant 0 : index
    %c0_28 = arith.constant 0 : index
    %c0_29 = arith.constant 0 : index
    %60 = vector.load %arg5[%c0_27, %c0_28, %c0_29] : memref<1x2x128xf32, #tpu.memory_space<vmem>>, vector<1x2x128xf32>
    tpu.vector_store %arg5[%c0_27, %c0_28, %c0_29], %59 {strides = array<i32>} : memref<1x2x128xf32, #tpu.memory_space<vmem>>, vector<1x2x128xf32>,
    return
  }
  func.func @transform_0(%arg0: i32) -> (i32, i32, i32) {
    %c0_i32 = arith.constant 0 : i32
    %c0_i32_0 = arith.constant 0 : i32
    %c0_i32_1 = arith.constant 0 : i32
    return %arg0, %c0_i32, %c0_i32_0 : i32, i32, i32
  }
  func.func @transform_1(%arg0: i32) -> (i32, i32, i32) {
    %c0_i32 = arith.constant 0 : i32
    %c0_i32_0 = arith.constant 0 : i32
    %c0_i32_1 = arith.constant 0 : i32
    return %arg0, %c0_i32, %c0_i32_0 : i32, i32, i32
  }
  func.func @transform_2(%arg0: i32) -> (i32, i32, i32) {
    %c0_i32 = arith.constant 0 : i32
    %c0_i32_0 = arith.constant 0 : i32
    %c0_i32_1 = arith.constant 0 : i32
    return %arg0, %c0_i32, %c0_i32_0 : i32, i32, i32
  }
  func.func @transform_3(%arg0: i32) -> (i32, i32, i32) {
    %c0_i32 = arith.constant 0 : i32
    %c0_i32_0 = arith.constant 0 : i32
    %c0_i32_1 = arith.constant 0 : i32
    return %arg0, %c0_i32, %c0_i32_0 : i32, i32, i32
  }
  func.func @transform_4(%arg0: i32) -> (i32, i32, i32) {
    %c0_i32 = arith.constant 0 : i32
    %c0_i32_0 = arith.constant 0 : i32
    %c0_i32_1 = arith.constant 0 : i32
    return %arg0, %c0_i32, %c0_i32_0 : i32, i32, i32
  }
}

</mosaic_0001>

<bundles_post_ra>
// kernel: tpu_custom_call.1
= control target key start
LH: loop header
LB: loop body
LE: loop exit
PB: predicated region body
PF: predicated region fallthrough
CT: control target
= control target key end

     0   :  { %s1089_s0 = inlined_call_operand.hbm [shape: f32[2,8,128], index: 0, kind: input, shape index: {}]   ;;  %s1090_s1 = inlined_call_operand.hbm [shape: f32[2,8,128], index: 1, kind: input, shape index: {}]   ;;  %s1091_s2 = inlined_call_operand.hbm [shape: f32[2,8,128], index: 2, kind: input, shape index: {}]   ;;  %s1092_s3 = inlined_call_operand.hbm [shape: f32[2,8,128], index: 3, kind: output, shape index: {0}]   ;;  %s1093_s4 = inlined_call_operand.hbm [shape: f32[2,2,128], index: 4, kind: output, shape index: {1}]  }
   0x1   :  { %1098 = sst [smem:[#allocation17_spill]] %s1089_s0 }
   0x2   :  { %1099 = sst [smem:[#allocation18_spill]] %s1090_s1 }
   0x3   :  { %10 = vsyncpa [#allocation3], 0 }
   0x4   :  { %12 = vsyncpa [#allocation3 + $0x1], 0 }
   0x5   :  { %13 = vsyncpa [#allocation6], 0 }
   0x6   :  { %15 = vsyncpa [#allocation6 + $0x1], 0 }
   0x7   :  { %16 = vsyncpa [#allocation4], 0 }
   0x8   :  { %18 = vsyncpa [#allocation4 + $0x1], 0 }
   0x9   :  { %19 = vsyncpa [#allocation10], 0 }
   0xa   :  { %21 = vsyncpa [#allocation10 + $0x1], 0  ;;  %s853_s15 = smov 0   ;;  %s855_s16 = smov 0  }
   0xb   :  { %s857_s17 = smov 0   ;;  %s859_s18 = smov 0  }
   0xc LB: > { %1100 = sst [smem:[#allocation15_spill]] %s816_s17  ;;  %s874_s19 = sadd.s32 4294967295, %s820_s18   ;;  %s820_s18 = sphi %s859_s18, %s1121_s18   ;;  %s816_s17 = sphi %s857_s17, %s1118_s17   ;;  %s812_s16 = sphi %s855_s16, %s1120_s16   ;;  %s808_s15 = sphi %s853_s15, %s1119_s15  }
   0xd   : > { %s547_s20 = sadd.s32 4294967294, %s820_s18   ;;  %s878_s21 = sadd.s32 1, %s820_s18  }
   0xe   : > { %s34_s22 = sadd.s32 1, %s816_s17  ;;  %s31_s23 = ssub.s32 %s820_s18, %s878_s21 }
   0xf   : > { %p41_p0 = scmp.ne.s32.totalorder %s816_s17, %s812_s16  ;;  %p32_p1 = scmp.eq.s32.totalorder %s31_s23, 0 }
  0x10   : > { %p42_p2 = scmp.eq.s32.totalorder %s820_s18, 0  ;;  %p47_p3 = scmp.ne.s32.totalorder %s812_s16, %s808_s15 }
  0x11   : > { %p48_p4 = scmp.eq.s32.totalorder %s874_s19, 0  ;;  %p123_p7 = scmp.eq.s32.totalorder %s874_s19, 1 }
  0x12   : > { %s890_s24 = scalar_select %p32_p1, %s816_s17, %s34_s22  }
  0x13   : > { %p43_p5 = por %p42_p2, %p41_p0  ;;  %p892_p6 = por %p48_p4, %p47_p3 }
  0x14   : > { %1101 = sst [smem:[#allocation16_spill]] %s890_s24  ;;  %p129_p8 = scmp.eq.s32.totalorder %s547_s20, 1 }
  0x15   : > { %s1102_s25 = scalar_select %p892_p6, 1, 0 }
  0x16   : > { %p595_p10 = scmp.lt.s32.totalorder %s820_s18, 2  ;;  %p899_p11 = por %p123_p7, %p41_p0 }
  0x17   : > { %p903_p12 = por %p129_p8, %p47_p3  ;;  %s1094_s28 = sand.u32 1, %s816_s17  }
  0x18   : > { %s1103_s26 = scalar_select %p899_p11, 1, 0 }
  0x19   : > { %s1104_s27 = scalar_select %p903_p12, 1, 0 }
  0x1a   : > { %s909_s29 = sshll.u32 %s820_s18, 7  ;;  %s913_s30 = sshll.u32 %s1094_s28, 3 }
  0x1b   : > { %p915_p13 = pnand %p595_p10, %p43_p5  ;;  %s193_s6 = sand.u32 1, %s820_s18  }
  0x1c   : > { %s1106_s1 = sld [smem:[#allocation18_spill]]  ;;  %s197_s10 = scalar_lea.vmem [#allocation5], %s913_s30 }
  0x1d   : > { %s204_s11 = sshll.u32 %s197_s10, 4  ;;  %s928_s12 = scalar_lea.sflag [#allocation6], %s193_s6  ;;  %s205_s11 = int_to_ptr.vmem [resolvable:$true] %s204_s11 }
  0x1e   : > { %p934_p2 = pneg %p915_p13 }
  0x22   : > { %s924_s9 = scalar_lea.hbm %s1106_s1, %s909_s29  ;;  %s643_s23 = scalar_lea.hbm %s1106_s1, 256 }
  0x23   : > { %s638_s13 = scalar_lea.hbm %s924_s9, 128  ;;  %p644_p5 = scmp.lt.s32.totalorder %s924_s9, %s1106_s1 }
  0x24   : > { %p639_p1 = scmp.ne.s32.totalorder %s924_s9, %s638_s13  ;;  %p645_p7 = scmp.lt.s32.totalorder %s643_s23, %s638_s13 }
  0x26   : > { %p641_p3 = pnand %p934_p2, %p639_p1  ;;  %p646_p8 = por %p645_p7, %p644_p5 }
  0x28   : > { %p642_p4 = pneg %p641_p3 }
  0x2a   : > { %p647_p10 = pnand %p646_p8, %p642_p4 }
  0x2c   : > { %650 = shalt.err (!%p647_p10)
}
  0x2d   : > { %s651_s6 = scalar_lea.vmem %s205_s11, 128  ;;  %s822_s10 = smov [#allocation5]  }
  0x2e   : > { %p652_p9 = scmp.ne.s32.totalorder %s205_s11, %s651_s6  ;;  %s656_s28 = sshll.u32 %s822_s10, 4  ;;  %s657_s28 = int_to_ptr.vmem [resolvable:$false] %s656_s28 }
  0x2f   : > { %s658_s24 = scalar_lea.vmem %s657_s28, 256  ;;  %p659_p1 = scmp.lt.s32.totalorder %s205_s11, %s657_s28 }
  0x30   : > { %p654_p0 = pnand %p652_p9, %p934_p2  ;;  %p660_p3 = scmp.lt.s32.totalorder %s658_s24, %s651_s6 }
  0x32   : > { %p655_p12 = pneg %p654_p0  ;;  %p661_p11 = por %p660_p3, %p659_p1 }
  0x34   : > { %p662_p6 = pnand %p661_p11, %p655_p12 }
  0x36   : > { %665 = shalt.err (!%p662_p6)
}
  0x37   : > { %584 = dma.hbm_to_vmem [thread:$0]  (!%p915_p13), %s924_s9, 128, %s205_s11, %s928_s12  }
  0x38   : > { %p227_p9 = scmp.lt.s32.totalorder %s820_s18, 3  ;;  %s1108_s0 = sld [smem:[#allocation17_spill]] }
  0x39   : > { %p1109_p0 = scmp.ge.s32.totalorder %s820_s18, 1  ;;  %s179_s22 = scalar_lea.vmem [#allocation2], %s913_s30 }
  0x3a   : > { %s186_s23 = sshll.u32 %s179_s22, 4  ;;  %s1111_s7 = sand.u32 1, %s816_s17   ;;  %s187_s23 = int_to_ptr.vmem [resolvable:$true] %s186_s23 }
  0x3b   : > { %p962_p6 = pnand %p1109_p0, %p227_p9  ;;  %s176_s8 = scalar_lea.sflag [#allocation3], %s1111_s7 }
  0x3d   : > { %s1110_s24 = scalar_select %p962_p6, 1, 0 }
  0x3e   : > { %s958_s28 = scalar_lea.hbm %s1108_s0, %s909_s29  ;;  %s671_s10 = scalar_lea.hbm %s1108_s0, 256 }
  0x3f   : > { %s666_s9 = scalar_lea.hbm %s958_s28, 128  ;;  %p672_p5 = scmp.lt.s32.totalorder %s958_s28, %s1108_s0 }
  0x40   : > { %p667_p11 = scmp.ne.s32.totalorder %s958_s28, %s666_s9  ;;  %p673_p7 = scmp.lt.s32.totalorder %s671_s10, %s666_s9 }
  0x42   : > { %p669_p12 = pnand %p667_p11, %p934_p2  ;;  %p674_p8 = por %p673_p7, %p672_p5 }
  0x44   : > { %p670_p4 = pneg %p669_p12 }
  0x46   : > { %p675_p10 = pnand %p674_p8, %p670_p4 }
  0x48   : > { %678 = shalt.err (!%p675_p10)
}
  0x49   : > { %s679_s22 = scalar_lea.vmem %s187_s23, 128  ;;  %s823_s7 = smov [#allocation2]  }
  0x4a   : > { %p680_p1 = scmp.ne.s32.totalorder %s187_s23, %s679_s22  ;;  %s684_s1 = sshll.u32 %s823_s7, 4  ;;  %s685_s1 = int_to_ptr.vmem [resolvable:$false] %s684_s1 }
  0x4b   : > { %s686_s17 = scalar_lea.vmem %s685_s1, 256  ;;  %p687_p0 = scmp.lt.s32.totalorder %s187_s23, %s685_s1 }
  0x4c   : > { %p682_p3 = pnand %p680_p1, %p934_p2  ;;  %p688_p11 = scmp.lt.s32.totalorder %s686_s17, %s679_s22 }
  0x4e   : > { %p683_p9 = pneg %p682_p3  ;;  %p689_p12 = por %p688_p11, %p687_p0 }
  0x50   : > { %p690_p6 = pnand %p689_p12, %p683_p9 }
  0x52   : > { %693 = shalt.err (!%p690_p6)
}
  0x53   : > { %581 = dma.hbm_to_vmem [thread:$0]  (!%p915_p13), %s958_s28, 128, %s187_s23, %s176_s8  }
  0x54   : > { %s220_s6 = scalar_lea.hbm %s1091_s2, %s909_s29  ;;  %s215_s10 = scalar_lea.vmem [#allocation7], %s913_s30 }
  0x55   : > { %s222_s13 = sshll.u32 %s215_s10, 4  ;;  %s694_s20 = scalar_lea.hbm %s220_s6, 128  ;;  %s223_s13 = int_to_ptr.vmem [resolvable:$true] %s222_s13 }
  0x56   : > { %p695_p4 = scmp.ne.s32.totalorder %s220_s6, %s694_s20  ;;  %s699_s22 = scalar_lea.hbm %s1091_s2, 256 }
  0x57   : > { %p700_p6 = scmp.lt.s32.totalorder %s220_s6, %s1091_s2  ;;  %p701_p8 = scmp.lt.s32.totalorder %s699_s22, %s694_s20 }
  0x58   : > { %p697_p5 = pnand %p695_p4, %p934_p2 }
  0x59   : > { %p702_p10 = por %p701_p8, %p700_p6 }
  0x5a   : > { %p698_p7 = pneg %p697_p5 }
  0x5c   : > { %p703_p1 = pnand %p702_p10, %p698_p7 }
  0x5e   : > { %706 = shalt.err (!%p703_p1)
}
  0x5f   : > { %s707_s29 = scalar_lea.vmem %s223_s13, 128  ;;  %s824_s30 = smov [#allocation7]  }
  0x60   : > { %p708_p3 = scmp.ne.s32.totalorder %s223_s13, %s707_s29  ;;  %s712_s28 = sshll.u32 %s824_s30, 4  ;;  %s713_s28 = int_to_ptr.vmem [resolvable:$false] %s712_s28 }
  0x61   : > { %s714_s23 = scalar_lea.vmem %s713_s28, 256  ;;  %p715_p11 = scmp.lt.s32.totalorder %s223_s13, %s713_s28 }
  0x62   : > { %p710_p9 = pnand %p708_p3, %p934_p2  ;;  %p716_p12 = scmp.lt.s32.totalorder %s714_s23, %s707_s29 }
  0x64   : > { %p711_p0 = pneg %p710_p9  ;;  %p717_p4 = por %p716_p12, %p715_p11 }
  0x66   : > { %p718_p5 = pnand %p717_p4, %p711_p0 }
  0x68   : > { %721 = shalt.err (!%p718_p5)
}
  0x69   : > { %587 = dma.hbm_to_vmem [thread:$0]  (!%p915_p13), %s220_s6, 128, %s223_s13, %s928_s12  }
  0x6a   : > { %p1112_p7 = scmp.ne.s32.totalorder %s1110_s24, 0 }
  0x6b   : > { %s1006_s0 = sand.u32 (!%p1112_p7), 1, %s812_s16   ;;  %p1113_p2 = scmp.ne.s32.totalorder (!%p1112_p7), %s1102_s25, 0 }
  0x6c   : > { %231 = sbr.rel (%p1112_p7) target bundleno = 647 (0x287), region = 32  ;;  %s1009_s14 = sshll.u32 (!%p1112_p7), %s1006_s0, 3 }
  0x6d   : > { %s234_s8 = scalar_lea.sflag (!%p1112_p7), [#allocation3], %s1006_s0  ;;  %s237_s9 = scalar_lea.vmem (!%p1112_p7), [#allocation2], %s1009_s14 }
  0x71   : > { %791 = dma.done.wait (%p1113_p2), %s234_s8, 128  }
  0x72   : > { %793 = vsyncadd (%p1113_p2), %s234_s8, 4294967168  ;;  %s242_s5 = sand.u32 1, %s874_s19   ;;  %s246_s24 = scalar_lea.vmem [#allocation5], %s1009_s14 }
  0x73   : > { %s243_s12 = scalar_lea.sflag [#allocation6], %s242_s5 }
  0x74   : > { %795 = dma.done.wait (%p1113_p2), %s243_s12, 256  }
  0x75   : > { %797 = vsyncadd (%p1113_p2), %s243_s12, 4294967040  ;;  %s255_s11 = scalar_lea.vmem [#allocation7], %s1009_s14  ;;  %v296_v1 = vld [vmem:[%s246_s24] sm:$0xff]  ;;  %v825_v2 = vmov 0.0   ;;  %v295_v18 = vld [vmem:[%s237_s9] sm:$0xff]  ;;  %s287_s25 = scalar_lea.vmem [#allocation8], %s1009_s14 }
  0x76   : > { %v297_v0 = vld [vmem:[%s255_s11] sm:$0xff]  ;;  %v322_v19 = vadd.f32 1e-08, %v295_v18  ;;  %s564_s6 = sshll.u32 %s874_s19, 7  ;;  %s389_s1 = sshll.u32 %s287_s25, 4  ;;  %s390_s1 = int_to_ptr.vmem [resolvable:$true] %s389_s1 }
  0x77   : > { %vm298_vm0 = vcmp.gt.f32.partialorder %v297_v0, 1e-08  ;;  %s387_s20 = scalar_lea.hbm %s1092_s3, %s564_s6  ;;  %s371_s17 = scalar_lea.sflag [#allocation4], %s1006_s0 }
  0x78   : > { %v299_v3 = vsel %vm298_vm0, 1.0, %v825_v2  ;;  %s722_s22 = scalar_lea.vmem %s390_s1, 128  ;;  %p1114_p6 = scmp.ne.s32.totalorder %s1103_s26, 0 }
  0x79   : > { %v309_v4 = vrot.slane %v299_v3, 4  ;;  %v300_v5 = vmul.f32 %v299_v3, %v296_v1  ;;  %p723_p13 = scmp.ne.s32.totalorder %s390_s1, %s722_s22  ;;  %s826_s7 = smov [#allocation8]  }
  0x7a   : > { %s726_s29 = sshll.u32 %s826_s7, 4  ;;  %s727_s29 = int_to_ptr.vmem [resolvable:$false] %s726_s29 }
  0x7b   : > { %v310_v6 = vadd.f32 %v309_v4, %v299_v3  ;;  %v301_v7 = vrot.slane %v300_v5, 4  ;;  %p724_p8 = pnand %p723_p13, %p1114_p6  ;;  %s728_s30 = scalar_lea.vmem %s727_s29, 256 }
  0x7c   : > { %p729_p1 = scmp.lt.s32.totalorder %s390_s1, %s727_s29  ;;  %p730_p3 = scmp.lt.s32.totalorder %s728_s30, %s722_s22 }
  0x7d   : > { %v311_v8 = vrot.slane %v310_v6, 2  ;;  %v302_v9 = vadd.f32 %v301_v7, %v300_v5  ;;  %p725_p10 = pneg %p724_p8 }
  0x7e   : > { %p731_p9 = por %p730_p3, %p729_p1 }
  0x7f   : > { %v312_v10 = vadd.f32 %v311_v8, %v310_v6  ;;  %v303_v11 = vrot.slane %v302_v9, 2 }
  0x80   : > { %p732_p0 = pnand %p731_p9, %p725_p10 }
  0x81   : > { %v313_v12 = vrot.slane %v312_v10, 1  ;;  %v304_v13 = vadd.f32 %v303_v11, %v302_v9 }
  0x83   : > { %v314_v14 = vadd.f32 %v313_v12, %v312_v10  ;;  %v305_v15 = vrot.slane %v304_v13, 1 }
  0x85   : > { %315 = vadd.xlane.f32.xlu0 %v314_v14  ;;  %v306_v16 = vadd.f32 %v305_v15, %v304_v13 }
  0x89   : > { %307 = vadd.xlane.f32.xlu0 %v306_v16 }
 0x10e   : > { %v316_v17 = vpop.xlane.xlu0 %315 }
 0x10f   : > { %630 = vrcp.f32 %v316_v17 }
 0x110   : > { %632 = vrcp.f32 %v322_v19 }
 0x112   : > { %v308_v20 = vpop.xlane.xlu0 %307 }
 0x11c   : > { %v631_v21 = vpop.eup %630 }
 0x11d   : > { %v318_v22 = vmul.f32 %v631_v21, %v308_v20  ;;  %v633_v24 = vpop.eup %632 }
 0x11f   : > { %v319_v23 = vmul.f32 0.5, %v318_v22 }
 0x121   : > { %vm320_vm1 = vcmp.gt.f32.partialorder %v296_v1, %v319_v23 }
 0x122   : > { %v321_v25 = vsel %vm320_vm1, 1.0, %v825_v2 }
 0x123   : > { %v324_v26 = vmul.f32 %v321_v25, %v296_v1  ;;  %v326_v27 = vrot.slane %v321_v25, 4 }
 0x125   : > { %v327_v28 = vadd.f32 %v326_v27, %v321_v25  ;;  %v325_v29 = vmul.f32 %v633_v24, %v324_v26 }
 0x127   : > { %v328_v30 = vrot.slane %v327_v28, 2  ;;  %v334_v31 = vrot.slane %v325_v29, 4 }
 0x129   : > { %v329_v32 = vadd.f32 %v328_v30, %v327_v28  ;;  %v335_v33 = vadd.f32 %v334_v31, %v325_v29 }
 0x12b   : > { %v330_v34 = vrot.slane %v329_v32, 1  ;;  %v336_v35 = vrot.slane %v335_v33, 2 }
 0x12d   : > { %v331_v36 = vadd.f32 %v330_v34, %v329_v32  ;;  %v337_v37 = vadd.f32 %v336_v35, %v335_v33 }
 0x12f   : > { %332 = vadd.xlane.f32.xlu1 %v331_v36  ;;  %v338_v38 = vrot.slane %v337_v37, 1 }
 0x131   : > { %v339_v39 = vadd.f32 %v338_v38, %v337_v37 }
 0x133   : > { %340 = vadd.xlane.f32.xlu1 %v339_v39 }
 0x1b8   : > { %v333_v40 = vpop.xlane.xlu1 %332 }
 0x1b9   : > { %634 = vrcp.f32 %v333_v40 }
 0x1bc   : > { %v341_v42 = vpop.xlane.xlu1 %340 }
 0x1c6   : > { %v635_v41 = vpop.eup %634 }
 0x1c7   : > { %v1024_v43 = vmul.f32 %v635_v41, %v341_v42 }
 0x1c9   : > { %v344_v44 = vmul.f32 %v1024_v43, %v321_v25  ;;  %v363_v45 = vmul.f32 %v1024_v43, %v295_v18 }
 0x1cb   : > { %v345_v46 = vsub.f32 %v325_v29, %v344_v44  ;;  %364 = vst [vmem:[%s287_s25] sm:$0xff] %v363_v45 }
 0x1cd   : > { %v346_v47 = vmul.f32 %v345_v46, %v345_v46 }
 0x1cf   : > { %v347_v48 = vrot.slane %v346_v47, 4 }
 0x1d1   : > { %v348_v49 = vadd.f32 %v347_v48, %v346_v47 }
 0x1d3   : > { %v349_v50 = vrot.slane %v348_v49, 2 }
 0x1d5   : > { %v350_v51 = vadd.f32 %v349_v50, %v348_v49 }
 0x1d7   : > { %v351_v52 = vrot.slane %v350_v51, 1 }
 0x1d9   : > { %v352_v53 = vadd.f32 %v351_v52, %v350_v51 }
 0x1db   : > { %353 = vadd.xlane.f32.xlu0 %v352_v53 }
 0x1dc   : > { %735 = shalt.err (!%p732_p0)
}
 0x1dd   : > { %s736_s28 = scalar_lea.hbm %s387_s20, 128  ;;  %s740_s8 = scalar_lea.hbm %s1092_s3, 256 }
 0x1de   : > { %p737_p11 = scmp.ne.s32.totalorder %s387_s20, %s736_s28  ;;  %p741_p5 = scmp.lt.s32.totalorder %s387_s20, %s1092_s3 }
 0x1df   : > { %p742_p7 = scmp.lt.s32.totalorder %s740_s8, %s736_s28 }
 0x1e0   : > { %p738_p12 = pnand %p737_p11, %p1114_p6 }
 0x1e1   : > { %p743_p2 = por %p742_p7, %p741_p5 }
 0x1e2   : > { %p739_p4 = pneg %p738_p12 }
 0x1e4   : > { %p744_p13 = pnand %p743_p2, %p739_p4 }
 0x1e6   : > { %747 = shalt.err (!%p744_p13)
}
 0x1e7   : > { %574 = dma.vmem_to_hbm [thread:$0]  (%p1114_p6), %s390_s1, 128, %s387_s20, %s371_s17   ;;  %v365_v56 = vlaneseq }
 0x1e8   : > { %s561_s12 = sshll.u32 %s1006_s0, 1  ;;  %s565_s24 = sshll.u32 %s874_s19, 5 }
 0x1e9   : > { %v366_v57 = vshrl.u32 %v365_v56, 7  ;;  %s294_s11 = scalar_lea.vmem [#allocation9], %s561_s12  ;;  %s1051_s13 = scalar_lea.hbm %s1093_s4, %s565_s24 }
 0x1ea   : > { %s402_s25 = sshll.u32 %s294_s11, 4  ;;  %s376_s20 = scalar_lea.sflag [#allocation10], %s1006_s0  ;;  %s403_s25 = int_to_ptr.vmem [resolvable:$true] %s402_s25 }
 0x1eb   : > { %vm367_vm3 = vcmp.eq.s32.totalorder %v366_v57, 0  ;;  %s748_s19 = scalar_lea.vmem %s403_s25, 32  ;;  %s827_s1 = smov [#allocation9]  }
 0x1ec   : > { %p749_p8 = scmp.ne.s32.totalorder %s403_s25, %s748_s19  ;;  %s752_s17 = sshll.u32 %s827_s1, 4  ;;  %s753_s17 = int_to_ptr.vmem [resolvable:$false] %s752_s17 }
 0x1ed   : > { %s754_s22 = scalar_lea.vmem %s753_s17, 64  ;;  %p755_p3 = scmp.lt.s32.totalorder %s403_s25, %s753_s17 }
 0x1ee   : > { %p750_p10 = pnand %p749_p8, %p1114_p6  ;;  %p756_p9 = scmp.lt.s32.totalorder %s754_s22, %s748_s19 }
 0x1f0   : > { %p751_p1 = pneg %p750_p10  ;;  %p757_p0 = por %p756_p9, %p755_p3 }
 0x1f2   : > { %p758_p11 = pnand %p757_p0, %p751_p1 }
 0x264   : > { %v354_v54 = vpop.xlane.xlu0 %353 }
 0x265   : > { %v355_v55 = vmul.f32 %v635_v41, %v354_v54 }
 0x267   : > { %636 = vrsqrt.f32 %v355_v55  ;;  %vm358_vm2 = vcmp.eq.f32.partialorder %v355_v55, inf  ;;  %v361_v60 = vand.u32 2147483648, %v355_v55  ;;  %vm360_vm4 = vcmp.eq.f32.partialorder %v355_v55, 0.0 }
 0x274   : > { %v637_v58 = vpop.eup %636 }
 0x275   : > { %v357_v59 = vmul.f32 %v637_v58, %v355_v55 }
 0x277   : > { %v359_v61 = vsel %vm358_vm2, %v355_v55, %v357_v59 }
 0x278   : > { %v362_v62 = vsel %vm360_vm4, %v361_v60, %v359_v61 }
 0x279   : > { %v368_v63 = vsel %vm367_vm3, %v362_v62, %v1024_v43 }
 0x27a   : > { %369 = vst [vmem:[%s294_s11] sm:$0x3] %v368_v63 }
 0x27b   : > { %761 = shalt.err (!%p758_p11)
}
 0x27c   : > { %s762_s7 = scalar_lea.hbm %s1051_s13, 32  ;;  %s766_s30 = scalar_lea.hbm %s1093_s4, 64 }
 0x27d   : > { %p763_p12 = scmp.ne.s32.totalorder %s1051_s13, %s762_s7  ;;  %p767_p7 = scmp.lt.s32.totalorder %s1051_s13, %s1093_s4 }
 0x27e   : > { %p768_p2 = scmp.lt.s32.totalorder %s766_s30, %s762_s7 }
 0x27f   : > { %p764_p4 = pnand %p763_p12, %p1114_p6 }
 0x280   : > { %p769_p13 = por %p768_p2, %p767_p7 }
 0x281   : > { %p765_p5 = pneg %p764_p4 }
 0x283   : > { %p770_p8 = pnand %p769_p13, %p765_p5 }
 0x285   : > { %773 = shalt.err (!%p770_p8)
}
 0x286   : > { %575 = dma.vmem_to_hbm [thread:$0]  (%p1114_p6), %s403_s25, 32, %s1051_s13, %s376_s20  }
 0x287 PF: > { %s414_s14 = sand.u32 1, %s808_s15   ;;  %p1115_p10 = scmp.ne.s32.totalorder %s1104_s27, 0 }
 0x288   : > { %p1116_p1 = scmp.ge.s32.totalorder %s820_s18, 2  ;;  %s415_s8 = scalar_lea.sflag [#allocation4], %s414_s14 }
 0x28a   : > { %p589_p3 = pnand %p1116_p1, %p1115_p10 }
 0x28c   : > { %p590_p9 = pneg %p589_p3 }
 0x28e   : > { %799 = dma.done.wait (%p590_p9), %s415_s8, 128  }
 0x28f   : > { %801 = vsyncadd (%p590_p9), %s415_s8, 4294967168  ;;  %s424_s9 = scalar_lea.sflag [#allocation10], %s414_s14 }
 0x290   : > { %803 = dma.done.wait (%p590_p9), %s424_s9, 32  }
 0x291   : > { %805 = vsyncadd (%p590_p9), %s424_s9, 4294967264  ;;  %s1117_s26 = sld [smem:[#allocation15_spill]]  ;;  %p24_p6 = scmp.ge.s32.totalorder %s878_s21, 4  }
 0x292   : > { %s1118_s17 = sld [smem:[#allocation16_spill]]  ;;  %s1119_s15 = smov %s812_s16 }
 0x293   : > { %s1121_s18 = smov %s878_s21  ;;  %26 = sbr.rel (!%p24_p6) target bundleno = 12 (0xc), region = 118 }
 0x297   : > { %s1120_s16 = smov %s1117_s26 }
 0x298   :  { %429 = vsyncpa [#allocation3], 1 }
 0x299   :  { %431 = vsyncpa [#allocation3 + $0x1], 1 }
 0x29a   :  { %432 = vsyncpa [#allocation6], 1 }
 0x29b   :  { %434 = vsyncpa [#allocation6 + $0x1], 1 }
 0x29c   :  { %435 = vsyncpa [#allocation4], 1 }
 0x29d   :  { %437 = vsyncpa [#allocation4 + $0x1], 1 }
 0x29e   :  { %438 = vsyncpa [#allocation10], 1 }
 0x29f   :  { %440 = vsyncpa [#allocation10 + $0x1], 1 }

</bundles_post_ra>
